<compile_context>
chip_gen: v7x
topology: tpu7x:2x2x1
jax: 0.10.0
libtpu: 0.0.40
codegen_flags: <defaults>
</compile_context>

<pallas_src>
import jax
import jax.numpy as jnp
from jax.experimental import pallas as pl
from jax.experimental.pallas import tpu as pltpu


def mlp_kernel(x_ref, w1_ref, b1_ref, w2_ref, b2_ref,
               w3_ref, b3_ref, w4_ref, b4_ref, o_ref):
    # x streams from HBM as f32; cast to bf16 here (VMEM-side, no extra HBM
    # traffic) so the MXU runs its native bf16 path with f32 accumulation.
    x = x_ref[...].astype(w1_ref.dtype)

    # fc1 + relu   (epilogue dtype follows the bias dtype: bf16 on v6e/v7x)
    h = jnp.dot(x, w1_ref[...], preferred_element_type=jnp.float32)
    h = jnp.maximum(h.astype(b1_ref.dtype) + b1_ref[...], 0).astype(w2_ref.dtype)
    # fc2 + relu
    h = jnp.dot(h, w2_ref[...], preferred_element_type=jnp.float32)
    h = jnp.maximum(h.astype(b2_ref.dtype) + b2_ref[...], 0).astype(w3_ref.dtype)
    # fc3 + relu
    h = jnp.dot(h, w3_ref[...], preferred_element_type=jnp.float32)
    h = jnp.maximum(h.astype(b3_ref.dtype) + b3_ref[...], 0).astype(w4_ref.dtype)
    # fc4 (keep logits f32 for the softmax)
    logits = jnp.dot(h, w4_ref[...], preferred_element_type=jnp.float32)
    logits = logits + b4_ref[...]

    # log_softmax over dim=1 (numerically stable, f32)
    m = jnp.max(logits, axis=1, keepdims=True)
    shifted = logits - m
    lse = jnp.log(jnp.sum(jnp.exp(shifted), axis=1, keepdims=True))
    o_ref[...] = (shifted - lse).astype(o_ref.dtype)


def _round_up(x, m):
    return ((x + m - 1) // m) * m


def _epilogue_dtype():
    # bf16 epilogues on v6e/v7x (bf16 VALU); f32 on v5-class chips.
    try:
        kind = jax.devices()[0].device_kind.lower()
    except Exception:
        return jnp.bfloat16
    return jnp.float32 if "v5" in kind else jnp.bfloat16


def net_forward(x, params, *, desired_tile_b=2048):
    """x: [B, 400] f32, params: dict of weights/biases. Returns [B, 10] log-probs (f32)."""
    w1, b1, w2, b2, w3, b3, w4, b4 = (
        params["w1"], params["b1"], params["w2"], params["b2"],
        params["w3"], params["b3"], params["w4"], params["b4"],
    )
    B, D_in = x.shape
    D_h = w1.shape[1]
    D_out = w4.shape[1]

    # --- grid / tile sizing ---------------------------------------------
    # Aim for >= 2 grid steps when the batch allows it (feeds both v7x TCs,
    # lets the input double-buffer overlap DMA with compute), with balanced
    # tiles rounded to 8 rows so padding waste stays at a few rows per step.
    B8 = _round_up(B, 8)
    min_steps = 2 if B8 >= 16 else 1
    num_steps = max(min_steps, pl.cdiv(B8, desired_tile_b))
    tile_b = _round_up(pl.cdiv(B8, num_steps), 8)
    B_pad = num_steps * tile_b
    if B_pad != B:
        x = jnp.pad(x, ((0, B_pad - B), (0, 0)))

    # bf16 weights (resident in VMEM); epilogue biases in bf16 on v6e/v7x.
    ep_dtype = _epilogue_dtype()
    w1b, w2b, w3b, w4b = (w.astype(jnp.bfloat16) for w in (w1, w2, w3, w4))
    b1e, b2e, b3e = (b.astype(ep_dtype) for b in (b1, b2, b3))
    b4f = b4.astype(jnp.float32)

    grid = (num_steps,)
    resident = lambda i: (0, 0)   # weights/biases: same block every step

    flops = 2 * B_pad * (D_in * D_h + D_h * D_h + D_h * D_h + D_h * D_out)
    bytes_accessed = (
        B_pad * D_in * 4                                   # x (f32, streamed)
        + sum(w.size * 2 for w in (w1b, w2b, w3b, w4b))    # bf16 weights
        + sum(int(b.size) * b.dtype.itemsize for b in (b1e, b2e, b3e, b4f))
        + B_pad * D_out * 4                                # f32 output
    )

    out = pl.pallas_call(
        mlp_kernel,
        out_shape=jax.ShapeDtypeStruct((B_pad, D_out), jnp.float32),
        grid=grid,
        in_specs=[
            pl.BlockSpec((tile_b, D_in), lambda i: (i, 0)),   # x tile (pipelined)
            pl.BlockSpec(w1b.shape, resident),
            pl.BlockSpec(b1e.shape, resident),
            pl.BlockSpec(w2b.shape, resident),
            pl.BlockSpec(b2e.shape, resident),
            pl.BlockSpec(w3b.shape, resident),
            pl.BlockSpec(b3e.shape, resident),
            pl.BlockSpec(w4b.shape, resident),
            pl.BlockSpec(b4f.shape, resident),
        ],
        out_specs=pl.BlockSpec((tile_b, D_out), lambda i: (i, 0)),
        compiler_params=pltpu.CompilerParams(
            dimension_semantics=("parallel",)),
        cost_estimate=pl.CostEstimate(
            flops=flops,
            transcendentals=B_pad * (D_out + 1),   # exp per logit + log per row
            bytes_accessed=bytes_accessed),
    )(x, w1b, b1e, w2b, b2e, w3b, b3e, w4b, b4f)

    return out[:B] if B_pad != B else out


def init_params(key):
    # Deterministic init mimicking nn.Linear default
    # (uniform(-1/sqrt(fan_in), 1/sqrt(fan_in))).
    dims = [(400, 64), (64, 64), (64, 64), (64, 10)]
    params = {}
    for idx, (fin, fout) in enumerate(dims, start=1):
        key, kw, kb = jax.random.split(key, 3)
        bound = 1.0 / (fin ** 0.5)
        # stored as [in, out] so the kernel does x @ W
        params[f"w{idx}"] = jax.random.uniform(
            kw, (fin, fout), jnp.float32, minval=-bound, maxval=bound)
        params[f"b{idx}"] = jax.random.uniform(
            kb, (1, fout), jnp.float32, minval=-bound, maxval=bound)
    return params


def _reference(x, params):
    # Pure-JAX reference (f32) of the PyTorch forward.
    h = jnp.maximum(x @ params["w1"] + params["b1"], 0.0)
    h = jnp.maximum(h @ params["w2"] + params["b2"], 0.0)
    h = jnp.maximum(h @ params["w3"] + params["b3"], 0.0)
    logits = h @ params["w4"] + params["b4"]
    return jax.nn.log_softmax(logits, axis=1)


def _check(x, params):
    out = net_forward(x, params)
    jax.block_until_ready(out)
    B = x.shape[0]
    assert out.shape == (B, 10)
    # rows of a log_softmax should exp-sum to 1
    row_sums = jnp.exp(out).sum(axis=1)
    assert bool(jnp.all(jnp.abs(row_sums - 1.0) < 1e-3))
    # matches the f32 reference up to bf16 matmul/epilogue precision
    ref = _reference(x, params)
    assert bool(jnp.max(jnp.abs(out - ref)) < 5e-2)


if __name__ == "__main__":
    key = jax.random.PRNGKey(0)
    kx, kx2, kp = jax.random.split(key, 3)
    params = init_params(kp)

    # Small batch (single grid step, no padding).
    x = jax.random.normal(kx, (8, 400), jnp.float32)
    _check(x, params)

    # Batch that exercises padding + multi-step grid (resident weight blocks).
    x2 = jax.random.normal(kx2, (20, 400), jnp.float32)
    _check(x2, params)

    print("KERNEL_OK")
</pallas_src>

<mosaic_0001>
module attributes {stable_mosaic.version = 11 : i64} {
  func.func @mlp_kernel(%arg0: i32, %arg1: memref<8x400xf32, #tpu.memory_space<vmem>>, %arg2: memref<400x64xbf16, #tpu.memory_space<vmem>>, %arg3: memref<1x64xbf16, #tpu.memory_space<vmem>>, %arg4: memref<64x64xbf16, #tpu.memory_space<vmem>>, %arg5: memref<1x64xbf16, #tpu.memory_space<vmem>>, %arg6: memref<64x64xbf16, #tpu.memory_space<vmem>>, %arg7: memref<1x64xbf16, #tpu.memory_space<vmem>>, %arg8: memref<64x10xbf16, #tpu.memory_space<vmem>>, %arg9: memref<1x10xf32, #tpu.memory_space<vmem>>, %arg10: memref<8x10xf32, #tpu.memory_space<vmem>>) attributes {dimension_semantics = [#tpu.dimension_semantics<parallel>], iteration_bounds = array<i64: 1>, scalar_prefetch = 0 : i64, scratch_operands = 0 : i64, tpu.core_type = #tpu.core_type<tc>, window_params = [{transform_indices = @transform_0, window_bounds = array<i64: 8, 400>}, {pipeline_mode = #tpu.pipeline_mode<synchronous>, transform_indices = @transform_1, window_bounds = array<i64: 400, 64>}, {pipeline_mode = #tpu.pipeline_mode<synchronous>, transform_indices = @transform_2, window_bounds = array<i64: 1, 64>}, {pipeline_mode = #tpu.pipeline_mode<synchronous>, transform_indices = @transform_3, window_bounds = array<i64: 64, 64>}, {pipeline_mode = #tpu.pipeline_mode<synchronous>, transform_indices = @transform_4, window_bounds = array<i64: 1, 64>}, {pipeline_mode = #tpu.pipeline_mode<synchronous>, transform_indices = @transform_5, window_bounds = array<i64: 64, 64>}, {pipeline_mode = #tpu.pipeline_mode<synchronous>, transform_indices = @transform_6, window_bounds = array<i64: 1, 64>}, {pipeline_mode = #tpu.pipeline_mode<synchronous>, transform_indices = @transform_7, window_bounds = array<i64: 64, 10>}, {pipeline_mode = #tpu.pipeline_mode<synchronous>, transform_indices = @transform_8, window_bounds = array<i64: 1, 10>}, {transform_indices = @transform_9, window_bounds = array<i64: 8, 10>}]} {
    %c0 = arith.constant 0 : index
    %c0_0 = arith.constant 0 : index
    %0 = vector.load %arg1[%c0, %c0_0] : memref<8x400xf32, #tpu.memory_space<vmem>>, vector<8x400xf32>
    %1 = arith.truncf %0 : vector<8x400xf32> to vector<8x400xbf16>
    %c0_1 = arith.constant 0 : index
    %c0_2 = arith.constant 0 : index
    %2 = vector.load %arg2[%c0_1, %c0_2] : memref<400x64xbf16, #tpu.memory_space<vmem>>, vector<400x64xbf16>
    %cst = arith.constant dense<0.000000e+00> : vector<8x64xf32>
    %3 = tpu.matmul %1, %2, %cst {dimension_numbers = #tpu.dot_dimension_numbers<[1], [0], [0], [1], [0, 0, 1, 1], [], []>} : vector<8x400xbf16>, vector<400x64xbf16>, vector<8x64xf32> -> vector<8x64xf32>
    %4 = arith.truncf %3 : vector<8x64xf32> to vector<8x64xbf16>
    %c0_3 = arith.constant 0 : index
    %c0_4 = arith.constant 0 : index
    %5 = vector.load %arg3[%c0_3, %c0_4] : memref<1x64xbf16, #tpu.memory_space<vmem>>, vector<1x64xbf16>
    %6 = vector.broadcast %5 : vector<1x64xbf16> to vector<8x64xbf16>
    %7 = arith.addf %4, %6 : vector<8x64xbf16>
    %cst_5 = arith.constant 0.000000e+00 : bf16
    %8 = vector.broadcast %cst_5 : bf16 to vector<8x64xbf16>
    %9 = arith.maximumf %7, %8 : vector<8x64xbf16>
    %c0_6 = arith.constant 0 : index
    %c0_7 = arith.constant 0 : index
    %10 = vector.load %arg4[%c0_6, %c0_7] : memref<64x64xbf16, #tpu.memory_space<vmem>>, vector<64x64xbf16>
    %cst_8 = arith.constant dense<0.000000e+00> : vector<8x64xf32>
    %11 = tpu.matmul %9, %10, %cst_8 {dimension_numbers = #tpu.dot_dimension_numbers<[1], [0], [0], [1], [0, 0, 1, 1], [], []>} : vector<8x64xbf16>, vector<64x64xbf16>, vector<8x64xf32> -> vector<8x64xf32>
    %12 = arith.truncf %11 : vector<8x64xf32> to vector<8x64xbf16>
    %c0_9 = arith.constant 0 : index
    %c0_10 = arith.constant 0 : index
    %13 = vector.load %arg5[%c0_9, %c0_10] : memref<1x64xbf16, #tpu.memory_space<vmem>>, vector<1x64xbf16>
    %14 = vector.broadcast %13 : vector<1x64xbf16> to vector<8x64xbf16>
    %15 = arith.addf %12, %14 : vector<8x64xbf16>
    %cst_11 = arith.constant 0.000000e+00 : bf16
    %16 = vector.broadcast %cst_11 : bf16 to vector<8x64xbf16>
    %17 = arith.maximumf %15, %16 : vector<8x64xbf16>
    %c0_12 = arith.constant 0 : index
    %c0_13 = arith.constant 0 : index
    %18 = vector.load %arg6[%c0_12, %c0_13] : memref<64x64xbf16, #tpu.memory_space<vmem>>, vector<64x64xbf16>
    %cst_14 = arith.constant dense<0.000000e+00> : vector<8x64xf32>
    %19 = tpu.matmul %17, %18, %cst_14 {dimension_numbers = #tpu.dot_dimension_numbers<[1], [0], [0], [1], [0, 0, 1, 1], [], []>} : vector<8x64xbf16>, vector<64x64xbf16>, vector<8x64xf32> -> vector<8x64xf32>
    %20 = arith.truncf %19 : vector<8x64xf32> to vector<8x64xbf16>
    %c0_15 = arith.constant 0 : index
    %c0_16 = arith.constant 0 : index
    %21 = vector.load %arg7[%c0_15, %c0_16] : memref<1x64xbf16, #tpu.memory_space<vmem>>, vector<1x64xbf16>
    %22 = vector.broadcast %21 : vector<1x64xbf16> to vector<8x64xbf16>
    %23 = arith.addf %20, %22 : vector<8x64xbf16>
    %cst_17 = arith.constant 0.000000e+00 : bf16
    %24 = vector.broadcast %cst_17 : bf16 to vector<8x64xbf16>
    %25 = arith.maximumf %23, %24 : vector<8x64xbf16>
    %c0_18 = arith.constant 0 : index
    %c0_19 = arith.constant 0 : index
    %26 = vector.load %arg8[%c0_18, %c0_19] : memref<64x10xbf16, #tpu.memory_space<vmem>>, vector<64x10xbf16>
    %cst_20 = arith.constant dense<0.000000e+00> : vector<8x10xf32>
    %27 = tpu.matmul %25, %26, %cst_20 {dimension_numbers = #tpu.dot_dimension_numbers<[1], [0], [0], [1], [0, 0, 1, 1], [], []>} : vector<8x64xbf16>, vector<64x10xbf16>, vector<8x10xf32> -> vector<8x10xf32>
    %c0_21 = arith.constant 0 : index
    %c0_22 = arith.constant 0 : index
    %28 = vector.load %arg9[%c0_21, %c0_22] : memref<1x10xf32, #tpu.memory_space<vmem>>, vector<1x10xf32>
    %29 = vector.broadcast %28 : vector<1x10xf32> to vector<8x10xf32>
    %30 = arith.addf %27, %29 : vector<8x10xf32>
    %cst_23 = arith.constant dense<0xFF800000> : vector<8xf32>
    %31 = vector.multi_reduction <maximumf>, %30, %cst_23 [1] : vector<8x10xf32> to vector<8xf32>
    %32 = vector.shape_cast %31 : vector<8xf32> to vector<8x1xf32>
    %33 = vector.broadcast %32 : vector<8x1xf32> to vector<8x10xf32>
    %34 = arith.subf %30, %33 : vector<8x10xf32>
    %35 = math.exp %34 : vector<8x10xf32>
    %cst_24 = arith.constant dense<0.000000e+00> : vector<8xf32>
    %36 = vector.multi_reduction <add>, %35, %cst_24 [1] : vector<8x10xf32> to vector<8xf32>
    %37 = vector.shape_cast %36 : vector<8xf32> to vector<8x1xf32>
    %38 = math.log %37 : vector<8x1xf32>
    %39 = vector.broadcast %38 : vector<8x1xf32> to vector<8x10xf32>
    %40 = arith.subf %34, %39 : vector<8x10xf32>
    %c0_25 = arith.constant 0 : index
    %c0_26 = arith.constant 0 : index
    %41 = vector.load %arg10[%c0_25, %c0_26] : memref<8x10xf32, #tpu.memory_space<vmem>>, vector<8x10xf32>
    tpu.vector_store %arg10[%c0_25, %c0_26], %40 {strides = array<i32>} : memref<8x10xf32, #tpu.memory_space<vmem>>, vector<8x10xf32>,
    return
  }
  func.func @transform_0(%arg0: i32) -> (i32, i32) {
    %c0_i32 = arith.constant 0 : i32
    %c0_i32_0 = arith.constant 0 : i32
    return %arg0, %c0_i32 : i32, i32
  }
  func.func @transform_1(%arg0: i32) -> (i32, i32) {
    %c0_i32 = arith.constant 0 : i32
    %c0_i32_0 = arith.constant 0 : i32
    %c0_i32_1 = arith.constant 0 : i32
    return %c0_i32, %c0_i32_0 : i32, i32
  }
  func.func @transform_2(%arg0: i32) -> (i32, i32) {
    %c0_i32 = arith.constant 0 : i32
    %c0_i32_0 = arith.constant 0 : i32
    %c0_i32_1 = arith.constant 0 : i32
    return %c0_i32, %c0_i32_0 : i32, i32
  }
  func.func @transform_3(%arg0: i32) -> (i32, i32) {
    %c0_i32 = arith.constant 0 : i32
    %c0_i32_0 = arith.constant 0 : i32
    %c0_i32_1 = arith.constant 0 : i32
    return %c0_i32, %c0_i32_0 : i32, i32
  }
  func.func @transform_4(%arg0: i32) -> (i32, i32) {
    %c0_i32 = arith.constant 0 : i32
    %c0_i32_0 = arith.constant 0 : i32
    %c0_i32_1 = arith.constant 0 : i32
    return %c0_i32, %c0_i32_0 : i32, i32
  }
  func.func @transform_5(%arg0: i32) -> (i32, i32) {
    %c0_i32 = arith.constant 0 : i32
    %c0_i32_0 = arith.constant 0 : i32
    %c0_i32_1 = arith.constant 0 : i32
    return %c0_i32, %c0_i32_0 : i32, i32
  }
  func.func @transform_6(%arg0: i32) -> (i32, i32) {
    %c0_i32 = arith.constant 0 : i32
    %c0_i32_0 = arith.constant 0 : i32
    %c0_i32_1 = arith.constant 0 : i32
    return %c0_i32, %c0_i32_0 : i32, i32
  }
  func.func @transform_7(%arg0: i32) -> (i32, i32) {
    %c0_i32 = arith.constant 0 : i32
    %c0_i32_0 = arith.constant 0 : i32
    %c0_i32_1 = arith.constant 0 : i32
    return %c0_i32, %c0_i32_0 : i32, i32
  }
  func.func @transform_8(%arg0: i32) -> (i32, i32) {
    %c0_i32 = arith.constant 0 : i32
    %c0_i32_0 = arith.constant 0 : i32
    %c0_i32_1 = arith.constant 0 : i32
    return %c0_i32, %c0_i32_0 : i32, i32
  }
  func.func @transform_9(%arg0: i32) -> (i32, i32) {
    %c0_i32 = arith.constant 0 : i32
    %c0_i32_0 = arith.constant 0 : i32
    return %arg0, %c0_i32 : i32, i32
  }
}

</mosaic_0001>

<bundles_post_ra>
// kernel: tpu_custom_call.1
= control target key start
LH: loop header
LB: loop body
LE: loop exit
PB: predicated region body
PF: predicated region fallthrough
CT: control target
= control target key end

     0   :  { %v804_v1 = vmov 0   ;;  %vm242_vm0 = vcmask 130048   ;;  %v805_v34 = vmov 0.0   ;;  %s1041_s0 = inlined_call_operand.vmem [shape: f32[8,400], index: 0, kind: input, shape index: {}]   ;;  %s1042_s1 = inlined_call_operand.vmem [shape: bf16[400,64], index: 1, kind: input, shape index: {}]   ;;  %s1043_s2 = inlined_call_operand.vmem [shape: bf16[1,64], index: 2, kind: input, shape index: {}]   ;;  %s1044_s3 = inlined_call_operand.vmem [shape: bf16[64,64], index: 3, kind: input, shape index: {}]   ;;  %s1045_s4 = inlined_call_operand.vmem [shape: bf16[1,64], index: 4, kind: input, shape index: {}]   ;;  %s1046_s5 = inlined_call_operand.vmem [shape: bf16[64,64], index: 5, kind: input, shape index: {}]   ;;  %s1047_s6 = inlined_call_operand.vmem [shape: bf16[1,64], index: 6, kind: input, shape index: {}]   ;;  %s1048_s7 = inlined_call_operand.vmem [shape: bf16[64,10], index: 7, kind: input, shape index: {}]   ;;  %s1049_s8 = inlined_call_operand.vmem [shape: f32[1,10], index: 8, kind: input, shape index: {}]   ;;  %s1050_s9 = inlined_call_operand.hbm [shape: f32[8,10], index: 9, kind: output, shape index: {}]  }
   0x1   :  { %v739_v0 = vld [vmem:[%s1042_s1 + $0x40] sm:$0xff]   ;;  %286 = vmatprep.subr.bf16.mxu1 %v804_v1  ;;  %v742_v4 = vld [vmem:[%s1042_s1 + $0x48] sm:$0xff]   ;;  %v745_v7 = vld [vmem:[%s1042_s1 + $0x50] sm:$0xff]  }
   0x2   :  { %v740_v2 = vld [vmem:[%s1042_s1 + $0x80] sm:$0xff]   ;;  %662 = vmatprep.subr.bf16.mxu0 %v739_v0  ;;  %v743_v5 = vld [vmem:[%s1042_s1 + $0x88] sm:$0xff]   ;;  %v746_v8 = vld [vmem:[%s1042_s1 + $0x90] sm:$0xff]  }
   0x3   :  { %v741_v3 = vld [vmem:[%s1042_s1] sm:$0xff]   ;;  %287 = vmatpush1.bf16.msra.mxu1 %v740_v2  ;;  %v744_v6 = vld [vmem:[%s1042_s1 + $0x8] sm:$0xff]   ;;  %v747_v9 = vld [vmem:[%s1042_s1 + $0x10] sm:$0xff]  }
   0x4   :  { %663 = vmatpush3.bf16.msra.mxu0 %v741_v3  ;;  %288 = vmatprep.subr.bf16.mxu1 %v804_v1  ;;  %v748_v10 = vld [vmem:[%s1042_s1 + $0x58] sm:$0xff]   ;;  %v751_v13 = vld [vmem:[%s1042_s1 + $0x60] sm:$0xff]   ;;  %v754_v16 = vld [vmem:[%s1042_s1 + $0x68] sm:$0xff]  }
   0x5   :  { %664 = vmatprep.subr.bf16.mxu0 %v742_v4  ;;  %v749_v11 = vld [vmem:[%s1042_s1 + $0x98] sm:$0xff]   ;;  %v752_v14 = vld [vmem:[%s1042_s1 + $0xa0] sm:$0xff]   ;;  %v755_v17 = vld [vmem:[%s1042_s1 + $0xa8] sm:$0xff]  }
   0x6   :  { %v750_v12 = vld [vmem:[%s1042_s1 + $0x18] sm:$0xff]   ;;  %v753_v15 = vld [vmem:[%s1042_s1 + $0x20] sm:$0xff]   ;;  %v756_v18 = vld [vmem:[%s1042_s1 + $0x28] sm:$0xff]  }
   0x7   :  { %289 = vmatpush1.bf16.msra.mxu1 %v743_v5  ;;  %v757_v19 = vld [vmem:[%s1042_s1 + $0x70] sm:$0xff]   ;;  %v760_v22 = vld [vmem:[%s1042_s1 + $0x78] sm:$0xff]   ;;  %v35_v23 = vld [vmem:[%s1041_s0 + $0x8] sm:$0xff] }
   0x8   :  { %665 = vmatpush3.bf16.msra.mxu0 %v744_v6  ;;  %290 = vmatprep.subr.bf16.mxu1 %v804_v1  ;;  %v758_v20 = vld [vmem:[%s1042_s1 + $0xb0] sm:$0xff]   ;;  %v761_v24 = vld [vmem:[%s1042_s1 + $0xb8] sm:$0xff]   ;;  %v39_v25 = vpack.c.bf16 %v35_v23, %v35_v23  ;;  %v34_v29 = vld [vmem:[%s1041_s0] sm:$0xff] }
   0x9   :  { %666 = vmatprep.subr.bf16.mxu0 %v745_v7  ;;  %v759_v21 = vld [vmem:[%s1042_s1 + $0x30] sm:$0xff]   ;;  %v37_v26 = vld [vmem:[%s1041_s0 + $0x18] sm:$0xff]  ;;  %v763_v30 = vld [vmem:[%s1042_s1 + $0xc0] sm:$0xff]   ;;  %v38_v33 = vpack.c.bf16 %v34_v29, %v34_v29 }
   0xa   :  { %v762_v27 = vld [vmem:[%s1042_s1 + $0x38] sm:$0xff]   ;;  %v41_v28 = vpack.c.bf16 %v37_v26, %v37_v26  ;;  %278 = vmatprep.mubr.bf16.mxu0 %v39_v25  ;;  %v36_v31 = vld [vmem:[%s1041_s0 + $0x10] sm:$0xff]  ;;  %v764_v32 = vld [vmem:[%s1044_s3] sm:$0xff]  }
   0xb   :  { %291 = vmatpush1.bf16.msra.mxu1 %v746_v8  ;;  %v40_v35 = vpack.c.bf16 %v36_v31, %v36_v31 }
   0xc   :  { %667 = vmatpush3.bf16.msra.mxu0 %v747_v9  ;;  %292 = vmatprep.subr.bf16.mxu1 %v804_v1 }
   0xd   :  { %668 = vmatprep.subr.bf16.mxu0 %v748_v10  ;;  %645 = vmatprep.mubr.msk.bf16.mxu1 %vm242_vm0, %v41_v28 }
   0xf   :  { %293 = vmatpush1.bf16.msra.mxu1 %v749_v11 }
  0x10   :  { %669 = vmatpush3.bf16.msra.mxu0 %v750_v12  ;;  %294 = vmatprep.subr.bf16.mxu1 %v804_v1 }
  0x11   :  { %670 = vmatprep.subr.bf16.mxu0 %v751_v13 }
  0x13   :  { %295 = vmatpush1.bf16.msra.mxu1 %v752_v14 }
  0x14   :  { %671 = vmatpush3.bf16.msra.mxu0 %v753_v15  ;;  %296 = vmatprep.subr.bf16.mxu1 %v804_v1 }
  0x15   :  { %672 = vmatprep.subr.bf16.mxu0 %v754_v16 }
  0x17   :  { %297 = vmatpush1.bf16.msra.mxu1 %v755_v17 }
  0x18   :  { %673 = vmatpush3.bf16.msra.mxu0 %v756_v18  ;;  %298 = vmatprep.subr.bf16.mxu1 %v804_v1 }
  0x19   :  { %674 = vmatprep.subr.bf16.mxu0 %v757_v19 }
  0x1b   :  { %299 = vmatpush1.bf16.msra.mxu1 %v758_v20 }
  0x1c   :  { %675 = vmatpush3.bf16.msra.mxu0 %v759_v21  ;;  %300 = vmatprep.subr.bf16.mxu1 %v804_v1 }
  0x1d   :  { %676 = vmatprep.subr.bf16.mxu0 %v760_v22 }
  0x1f   :  { %301 = vmatpush1.bf16.msra.mxu1 %v761_v24 }
  0x20   :  { %677 = vmatpush3.bf16.msra.mxu0 %v762_v27  ;;  %302 = vmatprep.subr.bf16.mxu1 %v804_v1 }
  0x21   :  { %699 = vmatprep.subr.bf16.mxu0 %v805_v34 }
  0x22   :  { %14 = vsyncpa [#allocation3], 0  ;;  %v765_v36 = vld [vmem:[%s1044_s3 + $0x8] sm:$0xff]   ;;  %v766_v37 = vld [vmem:[%s1044_s3 + $0x10] sm:$0xff]   ;;  %vm806_vm1 = vmmov 0   ;;  %v331_v41 = vlaneseq  ;;  %vm369_vm2 = vcmask 523264  }
  0x23   :  { %279 = vmatmul.mubr.bf16.vlgmr.msra.gmra.mrb[0].mxu0 %v38_v33  ;;  %303 = vmatpush1.bf16.msra.mxu1 %v763_v30  ;;  %v767_v38 = vld [vmem:[%s1044_s3 + $0x18] sm:$0xff]   ;;  %v768_v39 = vld [vmem:[%s1046_s5] sm:$0xff]   ;;  %v769_v40 = vld [vmem:[%s1046_s5 + $0x8] sm:$0xff]   ;;  %vm592_vm3 = vcmask 80896  }
  0x24   :  { %700 = vmatpush3.bf16.msra.mxu0 %v764_v32  ;;  %711 = vmatprep.subr.bf16.mxu1 %v805_v34  ;;  %v332_v42 = vshrl.u32 %v331_v41, 7  ;;  %v327_v43 = vld [vmem:[%s1043_s2] sm:$0x1]  ;;  %v770_v60 = vld [vmem:[%s1046_s5 + $0x10] sm:$0xff]   ;;  %v771_v61 = vld [vmem:[%s1046_s5 + $0x18] sm:$0xff]  }
  0x25   :  { %701 = vmatprep.subr.bf16.mxu0 %v805_v34  ;;  %707 = vmatprep.mubr.msk.bf16.mxu0 %vm806_vm1, %v805_v34  ;;  %v329_v45 = vpack.i.b16 %v327_v43, %v327_v43  ;;  %v772_v62 = vld [vmem:[%s1048_s7] sm:$0xff]   ;;  %v773_v63 = vld [vmem:[%s1048_s7 + $0x8] sm:$0xff]   ;;  %v774_v11 = vld [vmem:[%s1048_s7 + $0x10] sm:$0xff]  }
  0x26   :  { %319 = vmatmul.mubr.bf16.vlgmr.msra.gmra.mrb[0].mxu1 %v40_v35  ;;  %v333_v46 = vsub.s32 0, %v332_v42  ;;  %v414_v0 = vld [vmem:[%s1045_s4] sm:$0x1]  ;;  %v775_v12 = vld [vmem:[%s1048_s7 + $0x18] sm:$0xff]  }
  0x27   :  { %719 = vmatprep.mubr.msk.bf16.mxu1 %vm806_vm1, %v805_v34  ;;  %712 = vmatpush3.bf16.msra.mxu1 %v768_v39  ;;  %v416_v2 = vpack.i.b16 %v414_v0, %v414_v0  ;;  %v500_v13 = vld [vmem:[%s1047_s6] sm:$0x1]  ;;  %s807_s6 = smov [#allocation2]  }
  0x28   :  { %702 = vmatpush3.bf16.msra.mxu0 %v765_v36  ;;  %713 = vmatprep.subr.bf16.mxu1 %v805_v34  ;;  %v334_v53 = vrot.slane %v329_v45, %v333_v46  ;;  %v502_v14 = vpack.i.b16 %v500_v13, %v500_v13  ;;  %v656_v23 = vld [vmem:[%s1049_s8] ss:$0 sm:$0xff]  ;;  %s612_s7 = sshll.u32 %s807_s6, 4  ;;  %s613_s7 = int_to_ptr.vmem [resolvable:$true] %s612_s7 }
  0x29   :  { %703 = vmatprep.subr.bf16.mxu0 %v805_v34  ;;  %v421_v3 = vrot.slane %v416_v2, %v333_v46  ;;  %s780_s8 = scalar_lea.vmem %s613_s7, 128  ;;  %p785_p1 = scmp.lt.s32.totalorder %s613_s7, %s613_s7 }
  0x2a   :  { %v507_v15 = vrot.slane %v502_v14, %v333_v46  ;;  %p781_p0 = scmp.ne.s32.totalorder %s613_s7, %s780_s8  ;;  %p786_p2 = scmp.lt.s32.totalorder %s780_s8, %s780_s8 }
  0x2b   :  { %714 = vmatpush3.bf16.msra.mxu1 %v769_v40 }
  0x2c   :  { %704 = vmatpush3.bf16.msra.mxu0 %v766_v37  ;;  %715 = vmatprep.subr.bf16.mxu1 %v805_v34  ;;  %p787_p3 = por %p786_p2, %p785_p1 }
  0x2d   :  { %705 = vmatprep.subr.bf16.mxu0 %v805_v34 }
  0x2e   :  { %p788_p4 = pnand %p787_p3, %p781_p0 }
  0x2f   :  { %716 = vmatpush3.bf16.msra.mxu1 %v770_v60 }
  0x30   :  { %706 = vmatpush3.bf16.msra.mxu0 %v767_v38  ;;  %717 = vmatprep.subr.bf16.mxu1 %v805_v34 }
  0x31   :  { %723 = vmatprep.subr.bf16.mxu0 %v805_v34 }
  0x33   :  { %718 = vmatpush3.bf16.msra.mxu1 %v771_v61 }
  0xf6   :  { %v678_v44 = vpop.f32.mrb[0].mxu0 }
  0xf7   :  { %v679_v47 = vpop.f32.mrb[1].mxu0 }
  0xf8   :  { %v680_v48 = vadd.f32 %v679_v47, %v678_v44  ;;  %v681_v49 = vpop.f32.mrb[2].mxu0 }
  0xf9   :  { %v682_v50 = vpop.f32.mrb[3].mxu0  ;;  %v320_v51 = vpop.f32.mrb[0].mxu1 }
  0xfa   :  { %v321_v52 = vadd.f32 %v680_v48, %v320_v51  ;;  %v322_v54 = vpop.f32.mrb[1].mxu1 }
  0xfb   :  { %v323_v55 = vpop.f32.mrb[2].mxu1 }
  0xfc   :  { %v326_v56 = vpack.c.bf16 %v321_v52, %v321_v52  ;;  %v324_v57 = vpop.f32.mrb[3].mxu1 }
  0xfe   :  { %v335_v58 = vadd.bf16 %v334_v53, %v326_v56 }
 0x100   :  { %v336_v59 = vmax.bf16 %v804_v1, %v335_v58 }
 0x102   :  { %708 = vmatmul.mubr.msk.bf16.vlgmr.msra.gmra.mrb[4].mxu0 %vm369_vm2, %v336_v59 }
 0x103   :  { %731 = vmatprep.mubr.msk.bf16.mxu0 %vm806_vm1, %v805_v34  ;;  %724 = vmatpush3.bf16.msra.mxu0 %v772_v62 }
 0x104   :  { %725 = vmatprep.subr.bf16.mxu0 %v805_v34 }
 0x107   :  { %726 = vmatpush3.bf16.msra.mxu0 %v773_v63 }
 0x108   :  { %727 = vmatprep.subr.bf16.mxu0 %v805_v34 }
 0x10b   :  { %728 = vmatpush3.bf16.msra.mxu0 %v774_v11 }
 0x10c   :  { %729 = vmatprep.subr.bf16.mxu0 %v805_v34 }
 0x10f   :  { %730 = vmatpush3.bf16.msra.mxu0 %v775_v12 }
 0x1d5   :  { %v407_v4 = vpop.f32.mrb[4].mxu0 }
 0x1d6   :  { %v413_v5 = vpack.c.bf16 %v407_v4, %v407_v4  ;;  %v709_v6 = vpop.f32.mrb[5].mxu0 }
 0x1d7   :  { %v410_v7 = vpop.f32.mrb[6].mxu0 }
 0x1d8   :  { %v422_v8 = vadd.bf16 %v421_v3, %v413_v5  ;;  %v710_v9 = vpop.f32.mrb[7].mxu0 }
 0x1da   :  { %v423_v10 = vmax.bf16 %v804_v1, %v422_v8 }
 0x1dc   :  { %720 = vmatmul.mubr.msk.bf16.vlgmr.msra.gmra.mrb[4].mxu1 %vm369_vm2, %v423_v10 }
 0x2af   :  { %v493_v16 = vpop.f32.mrb[4].mxu1 }
 0x2b0   :  { %v499_v17 = vpack.c.bf16 %v493_v16, %v493_v16  ;;  %v721_v18 = vpop.f32.mrb[5].mxu1 }
 0x2b1   :  { %v496_v19 = vpop.f32.mrb[6].mxu1 }
 0x2b2   :  { %v508_v20 = vadd.bf16 %v507_v15, %v499_v17  ;;  %v722_v21 = vpop.f32.mrb[7].mxu1 }
 0x2b4   :  { %v509_v22 = vmax.bf16 %v804_v1, %v508_v20 }
 0x2b6   :  { %732 = vmatmul.mubr.msk.bf16.vlgmr.msra.gmra.mrb[8].mxu0 %vm369_vm2, %v509_v22 }
 0x389   :  { %v586_v24 = vpop.f32.mrb[8].mxu0 }
 0x38a   :  { %v587_v25 = vadd.f32 %v656_v23, %v586_v24  ;;  %v733_v26 = vpop.f32.mrb[9].mxu0 }
 0x38b   :  { %v589_v27 = vpop.f32.mrb[10].mxu0 }
 0x38c   :  { %v734_v28 = vpop.f32.mrb[11].mxu0  ;;  %v593_v29 = vsel %vm592_vm3, %v587_v25, -inf }
 0x38d   :  { %594 = vmax.xlane.f32.xlu0 %v593_v29 }
 0x41a   :  { %v595_v30 = vpop.xlane.xlu0 %594 }
 0x41b   :  { %v596_v31 = vsub.f32 %v587_v25, %v595_v30 }
 0x41d   :  { %v597_v32 = vmul.f32 1.442695, %v596_v31 }
 0x41f   :  { %776 = vpow2.f32 %v597_v32 }
 0x429   :  { %v777_v1 = vpop.eup %776 }
 0x42a   :  { %v599_v33 = vsel %vm592_vm3, %v777_v1, 0.0 }
 0x42b   :  { %600 = vadd.xlane.f32.xlu0 %v599_v33 }
 0x4b8   :  { %v601_v34 = vpop.xlane.xlu0 %600 }
 0x4b9   :  { %778 = vlog2.f32 %v601_v34 }
 0x4c3   :  { %v779_v35 = vpop.eup %778 }
 0x4c4   :  { %v603_v36 = vmul.f32 0.6931472, %v779_v35 }
 0x4c6   :  { %v604_v37 = vsub.f32 %v596_v31, %v603_v36 }
 0x4c8   :  { %605 = vst.msk [vmem:[#allocation2] sm:$0xff] %vm592_vm3, %v604_v37 }
 0x4c9   :  { %791 = shalt.err (!%p788_p4)
}
 0x4ca   :  { %s792_s30 = scalar_lea.hbm %s1050_s9, 128 }
 0x4cb   :  { %p793_p5 = scmp.ne.s32.totalorder %s1050_s9, %s792_s30  ;;  %p796_p6 = scmp.lt.u32.totalorder %s792_s30, %s1050_s9 }
 0x4cd   :  { %p798_p7 = pnand %p796_p6, %p793_p5 }
 0x4cf   :  { %801 = shalt.err (!%p798_p7)
}
 0x4d0   :  { %615 = dma.vmem_to_hbm [thread:$0]  %s613_s7, 128, %s1050_s9, [#allocation3]  }
 0x4d1   :  { %802 = dma.done.wait [#allocation3], 128  }
 0x4d2   :  { %803 = vsyncadd [#allocation3], 4294967168 }
 0x4d3   :  { %619 = vsyncpa [#allocation3], 1 }

</bundles_post_ra>
